<compile_context>
chip_gen: v7x
topology: tpu7x:2x2x1
jax: 0.10.0
libtpu: 0.0.40
codegen_flags: <defaults>
</compile_context>

<pallas_src>
import functools

import jax
import jax.numpy as jnp
from jax.experimental import pallas as pl
from jax.experimental.pallas import tpu as pltpu

_LANE = 128      # TPU lane width (last vreg dim)
_SUBLANE = 8     # f32 sublane width (second-to-last vreg dim)


def _round_up(n, m):
    return ((n + m - 1) // m) * m


def _mlp_kernel(x_ref, w1_ref, b1_ref, w2_ref, b2_ref, w3_ref, b3_ref, o_ref):
    """(Linear -> Tanh) x 3 on one batch tile; weights stay resident in VMEM."""
    # Layer 1: Linear(obs, hid) + Tanh (f32 accumulation on the MXU).
    h1 = jnp.dot(x_ref[...], w1_ref[...], preferred_element_type=jnp.float32)
    h1 = jnp.tanh(h1 + b1_ref[...])                  # bias + tanh in f32 (EUP)
    # Layer 2: Linear(hid, hid) + Tanh.
    h2 = jnp.dot(h1.astype(w2_ref.dtype), w2_ref[...],
                 preferred_element_type=jnp.float32)
    h2 = jnp.tanh(h2 + b2_ref[...])
    # Layer 3: Linear(hid, act) + Tanh.
    h3 = jnp.dot(h2.astype(w3_ref.dtype), w3_ref[...],
                 preferred_element_type=jnp.float32)
    o_ref[...] = jnp.tanh(h3 + b3_ref[...]).astype(o_ref.dtype)


@functools.partial(jax.jit, static_argnames=("block_batch", "matmul_dtype"))
def net_forward(x, params, *, block_batch=1024, matmul_dtype=jnp.float32):
    """Forward pass of Net: (Linear -> Tanh) x 3 fused into one Pallas kernel.

    x:      [batch, obs_size] float32
    params: dict with w1 [obs,hid], b1 [1,hid], w2 [hid,hid], b2 [1,hid],
            w3 [hid,act], b3 [1,act]  (weights already transposed to [in,out]).
    """
    batch, obs = x.shape
    hid = params["w1"].shape[1]
    act = params["w3"].shape[1]

    # ---- lane-dense padding of the hidden dim (e.g. 64 -> 128) ---------------
    hid_p = _round_up(hid, _LANE)
    dh = hid_p - hid
    w1 = jnp.pad(params["w1"], ((0, 0), (0, dh))).astype(matmul_dtype)
    b1 = jnp.pad(params["b1"], ((0, 0), (0, dh))).astype(jnp.float32)
    w2 = jnp.pad(params["w2"], ((0, dh), (0, dh))).astype(matmul_dtype)
    b2 = jnp.pad(params["b2"], ((0, 0), (0, dh))).astype(jnp.float32)
    w3 = jnp.pad(params["w3"], ((0, dh), (0, 0))).astype(matmul_dtype)
    b3 = params["b3"].astype(jnp.float32)
    # NOTE: act_size left unpadded (full-extent last block dim) -> masked store,
    # but avoids writing 128/act x more HBM bytes; the kernel is input-bound.

    # ---- batch tiling (multiple of the f32 sublane width) --------------------
    tb = _round_up(min(block_batch, _round_up(batch, _SUBLANE)), _SUBLANE)
    batch_p = _round_up(batch, tb)
    x_p = jnp.pad(x, ((0, batch_p - batch), (0, 0))).astype(matmul_dtype)
    grid = (batch_p // tb,)

    # ---- advisory cost estimate so XLA overlaps this call with other HLO -----
    itemsize = jnp.dtype(matmul_dtype).itemsize
    bytes_accessed = int(
        x_p.size * itemsize
        + (w1.size + w2.size + w3.size) * itemsize
        + (b1.size + b2.size + b3.size) * 4
        + batch_p * act * 4
    )
    cost = pl.CostEstimate(
        flops=2 * batch_p * (obs * hid_p + hid_p * hid_p + hid_p * act),
        transcendentals=batch_p * (2 * hid_p + act),
        bytes_accessed=bytes_accessed,
    )

    def _resident(shape):
        # Same block index every grid step -> DMA'd once, VMEM-resident.
        return pl.BlockSpec(shape, lambda i: (0, 0))

    out = pl.pallas_call(
        _mlp_kernel,
        out_shape=jax.ShapeDtypeStruct((batch_p, act), jnp.float32),
        grid=grid,
        in_specs=[
            pl.BlockSpec((tb, obs), lambda i: (i, 0)),   # x tiled over batch
            _resident((obs, hid_p)),                     # w1
            _resident((1, hid_p)),                       # b1
            _resident((hid_p, hid_p)),                   # w2
            _resident((1, hid_p)),                       # b2
            _resident((hid_p, act)),                     # w3
            _resident((1, act)),                         # b3
        ],
        out_specs=pl.BlockSpec((tb, act), lambda i: (i, 0)),
        compiler_params=pltpu.CompilerParams(
            dimension_semantics=("parallel",),           # shard batch tiles across TCs
        ),
        cost_estimate=cost,
    )(x_p, w1, b1, w2, b2, w3, b3)
    return out[:batch]


def init_params(key, obs_size, act_size, hid_size=64):
    """Deterministic init mimicking nn.Linear's uniform(-1/sqrt(in), 1/sqrt(in))."""
    ks = jax.random.split(key, 6)

    def linear_init(kw, kb, fan_in, fan_out):
        bound = 1.0 / jnp.sqrt(jnp.float32(fan_in))
        # stored as [in, out] so the kernel computes x @ W
        w = jax.random.uniform(kw, (fan_in, fan_out), jnp.float32, -bound, bound)
        b = jax.random.uniform(kb, (1, fan_out), jnp.float32, -bound, bound)
        return w, b

    w1, b1 = linear_init(ks[0], ks[1], obs_size, hid_size)
    w2, b2 = linear_init(ks[2], ks[3], hid_size, hid_size)
    w3, b3 = linear_init(ks[4], ks[5], hid_size, act_size)
    return {"w1": w1, "b1": b1, "w2": w2, "b2": b2, "w3": w3, "b3": b3}


if __name__ == "__main__":
    key = jax.random.PRNGKey(0)
    k_x, k_p = jax.random.split(key)

    batch, obs_size, act_size, hid_size = 8, 32, 8, 64
    x = jax.random.normal(k_x, (batch, obs_size), jnp.float32)
    params = init_params(k_p, obs_size, act_size, hid_size)

    # f32 matmul path (exact vs. reference).
    out = jax.block_until_ready(net_forward(x, params))

    # Pure-JAX reference of the same computation.
    ref = jnp.tanh(
        jnp.tanh(
            jnp.tanh(x @ params["w1"] + params["b1"]) @ params["w2"] + params["b2"]
        ) @ params["w3"] + params["b3"]
    )
    assert out.shape == (batch, act_size)
    assert jnp.allclose(out, ref, atol=1e-5, rtol=1e-5)

    # bf16 matmul path (the MXU throughput lever on v6e/v7x); bias/tanh stay f32.
    out_bf16 = jax.block_until_ready(
        net_forward(x, params, matmul_dtype=jnp.bfloat16)
    )
    assert out_bf16.shape == (batch, act_size)
    assert jnp.allclose(out_bf16, ref, atol=5e-2, rtol=5e-2)

    print("KERNEL_OK")
</pallas_src>

<mosaic_0001>
module attributes {stable_mosaic.version = 11 : i64} {
  func.func @_mlp_kernel(%arg0: i32, %arg1: memref<8x32xf32, #tpu.memory_space<vmem>>, %arg2: memref<32x128xf32, #tpu.memory_space<vmem>>, %arg3: memref<1x128xf32, #tpu.memory_space<vmem>>, %arg4: memref<128x128xf32, #tpu.memory_space<vmem>>, %arg5: memref<1x128xf32, #tpu.memory_space<vmem>>, %arg6: memref<128x8xf32, #tpu.memory_space<vmem>>, %arg7: memref<1x8xf32, #tpu.memory_space<vmem>>, %arg8: memref<8x8xf32, #tpu.memory_space<vmem>>) attributes {dimension_semantics = [#tpu.dimension_semantics<parallel>], iteration_bounds = array<i64: 1>, scalar_prefetch = 0 : i64, scratch_operands = 0 : i64, tpu.core_type = #tpu.core_type<tc>, window_params = [{transform_indices = @transform_0, window_bounds = array<i64: 8, 32>}, {pipeline_mode = #tpu.pipeline_mode<synchronous>, transform_indices = @transform_1, window_bounds = array<i64: 32, 128>}, {pipeline_mode = #tpu.pipeline_mode<synchronous>, transform_indices = @transform_2, window_bounds = array<i64: 1, 128>}, {pipeline_mode = #tpu.pipeline_mode<synchronous>, transform_indices = @transform_3, window_bounds = array<i64: 128, 128>}, {pipeline_mode = #tpu.pipeline_mode<synchronous>, transform_indices = @transform_4, window_bounds = array<i64: 1, 128>}, {pipeline_mode = #tpu.pipeline_mode<synchronous>, transform_indices = @transform_5, window_bounds = array<i64: 128, 8>}, {pipeline_mode = #tpu.pipeline_mode<synchronous>, transform_indices = @transform_6, window_bounds = array<i64: 1, 8>}, {transform_indices = @transform_7, window_bounds = array<i64: 8, 8>}]} {
    %c0 = arith.constant 0 : index
    %c0_0 = arith.constant 0 : index
    %0 = vector.load %arg1[%c0, %c0_0] : memref<8x32xf32, #tpu.memory_space<vmem>>, vector<8x32xf32>
    %c0_1 = arith.constant 0 : index
    %c0_2 = arith.constant 0 : index
    %1 = vector.load %arg2[%c0_1, %c0_2] : memref<32x128xf32, #tpu.memory_space<vmem>>, vector<32x128xf32>
    %cst = arith.constant dense<0.000000e+00> : vector<8x128xf32>
    %2 = tpu.matmul %0, %1, %cst {dimension_numbers = #tpu.dot_dimension_numbers<[1], [0], [0], [1], [0, 0, 1, 1], [], []>} : vector<8x32xf32>, vector<32x128xf32>, vector<8x128xf32> -> vector<8x128xf32>
    %c0_3 = arith.constant 0 : index
    %c0_4 = arith.constant 0 : index
    %3 = vector.load %arg3[%c0_3, %c0_4] : memref<1x128xf32, #tpu.memory_space<vmem>>, vector<1x128xf32>
    %4 = vector.broadcast %3 : vector<1x128xf32> to vector<8x128xf32>
    %5 = arith.addf %2, %4 : vector<8x128xf32>
    %6 = math.tanh %5 : vector<8x128xf32>
    %c0_5 = arith.constant 0 : index
    %c0_6 = arith.constant 0 : index
    %7 = vector.load %arg4[%c0_5, %c0_6] : memref<128x128xf32, #tpu.memory_space<vmem>>, vector<128x128xf32>
    %cst_7 = arith.constant dense<0.000000e+00> : vector<8x128xf32>
    %8 = tpu.matmul %6, %7, %cst_7 {dimension_numbers = #tpu.dot_dimension_numbers<[1], [0], [0], [1], [0, 0, 1, 1], [], []>} : vector<8x128xf32>, vector<128x128xf32>, vector<8x128xf32> -> vector<8x128xf32>
    %c0_8 = arith.constant 0 : index
    %c0_9 = arith.constant 0 : index
    %9 = vector.load %arg5[%c0_8, %c0_9] : memref<1x128xf32, #tpu.memory_space<vmem>>, vector<1x128xf32>
    %10 = vector.broadcast %9 : vector<1x128xf32> to vector<8x128xf32>
    %11 = arith.addf %8, %10 : vector<8x128xf32>
    %12 = math.tanh %11 : vector<8x128xf32>
    %c0_10 = arith.constant 0 : index
    %c0_11 = arith.constant 0 : index
    %13 = vector.load %arg6[%c0_10, %c0_11] : memref<128x8xf32, #tpu.memory_space<vmem>>, vector<128x8xf32>
    %cst_12 = arith.constant dense<0.000000e+00> : vector<8x8xf32>
    %14 = tpu.matmul %12, %13, %cst_12 {dimension_numbers = #tpu.dot_dimension_numbers<[1], [0], [0], [1], [0, 0, 1, 1], [], []>} : vector<8x128xf32>, vector<128x8xf32>, vector<8x8xf32> -> vector<8x8xf32>
    %c0_13 = arith.constant 0 : index
    %c0_14 = arith.constant 0 : index
    %15 = vector.load %arg7[%c0_13, %c0_14] : memref<1x8xf32, #tpu.memory_space<vmem>>, vector<1x8xf32>
    %16 = vector.broadcast %15 : vector<1x8xf32> to vector<8x8xf32>
    %17 = arith.addf %14, %16 : vector<8x8xf32>
    %18 = math.tanh %17 : vector<8x8xf32>
    %c0_15 = arith.constant 0 : index
    %c0_16 = arith.constant 0 : index
    %19 = vector.load %arg8[%c0_15, %c0_16] : memref<8x8xf32, #tpu.memory_space<vmem>>, vector<8x8xf32>
    tpu.vector_store %arg8[%c0_15, %c0_16], %18 {strides = array<i32>} : memref<8x8xf32, #tpu.memory_space<vmem>>, vector<8x8xf32>,
    return
  }
  func.func @transform_0(%arg0: i32) -> (i32, i32) {
    %c0_i32 = arith.constant 0 : i32
    %c0_i32_0 = arith.constant 0 : i32
    return %arg0, %c0_i32 : i32, i32
  }
  func.func @transform_1(%arg0: i32) -> (i32, i32) {
    %c0_i32 = arith.constant 0 : i32
    %c0_i32_0 = arith.constant 0 : i32
    %c0_i32_1 = arith.constant 0 : i32
    return %c0_i32, %c0_i32_0 : i32, i32
  }
  func.func @transform_2(%arg0: i32) -> (i32, i32) {
    %c0_i32 = arith.constant 0 : i32
    %c0_i32_0 = arith.constant 0 : i32
    %c0_i32_1 = arith.constant 0 : i32
    return %c0_i32, %c0_i32_0 : i32, i32
  }
  func.func @transform_3(%arg0: i32) -> (i32, i32) {
    %c0_i32 = arith.constant 0 : i32
    %c0_i32_0 = arith.constant 0 : i32
    %c0_i32_1 = arith.constant 0 : i32
    return %c0_i32, %c0_i32_0 : i32, i32
  }
  func.func @transform_4(%arg0: i32) -> (i32, i32) {
    %c0_i32 = arith.constant 0 : i32
    %c0_i32_0 = arith.constant 0 : i32
    %c0_i32_1 = arith.constant 0 : i32
    return %c0_i32, %c0_i32_0 : i32, i32
  }
  func.func @transform_5(%arg0: i32) -> (i32, i32) {
    %c0_i32 = arith.constant 0 : i32
    %c0_i32_0 = arith.constant 0 : i32
    %c0_i32_1 = arith.constant 0 : i32
    return %c0_i32, %c0_i32_0 : i32, i32
  }
  func.func @transform_6(%arg0: i32) -> (i32, i32) {
    %c0_i32 = arith.constant 0 : i32
    %c0_i32_0 = arith.constant 0 : i32
    %c0_i32_1 = arith.constant 0 : i32
    return %c0_i32, %c0_i32_0 : i32, i32
  }
  func.func @transform_7(%arg0: i32) -> (i32, i32) {
    %c0_i32 = arith.constant 0 : i32
    %c0_i32_0 = arith.constant 0 : i32
    return %arg0, %c0_i32 : i32, i32
  }
}

</mosaic_0001>

<bundles_post_ra>
// kernel: net_forward.1
= control target key start
LH: loop header
LB: loop body
LE: loop exit
PB: predicated region body
PF: predicated region fallthrough
CT: control target
= control target key end

     0   :  { %v530_v3 = vmov 0.0|0.0   ;;  %vm531_vm0 = vmmov 0   ;;  %v532_v6 = vmov 0.0   ;;  %s727_s0 = inlined_call_operand.vmem [shape: f32[8,32], index: 0, kind: input, shape index: {}]   ;;  %s728_s1 = inlined_call_operand.vmem [shape: f32[32,128], index: 1, kind: input, shape index: {}]   ;;  %s729_s2 = inlined_call_operand.vmem [shape: f32[1,128], index: 2, kind: input, shape index: {}]   ;;  %s730_s3 = inlined_call_operand.vmem [shape: f32[128,128], index: 3, kind: input, shape index: {}]   ;;  %s731_s4 = inlined_call_operand.vmem [shape: f32[1,128], index: 4, kind: input, shape index: {}]   ;;  %s732_s5 = inlined_call_operand.vmem [shape: f32[128,8], index: 5, kind: input, shape index: {}]   ;;  %s733_s6 = inlined_call_operand.vmem [shape: f32[1,8], index: 6, kind: input, shape index: {}]   ;;  %s734_s7 = inlined_call_operand.hbm [shape: f32[8,8], index: 7, kind: output, shape index: {}]  }
   0x1   :  { %v28_v0 = vld [vmem:[%s728_s1] sm:$0xff]  ;;  %v29_v1 = vld [vmem:[%s728_s1 + $0x8] sm:$0xff]  ;;  %v30_v2 = vld [vmem:[%s728_s1 + $0x10] sm:$0xff]  ;;  %442 = vmatprep.subr.bf16.mxu0 %v530_v3  ;;  %369 = vmatprep.mubr.msk.f32.mxu0 %vm531_vm0, %v532_v6 }
   0x2   :  { %v443_v4 = vpack.c.bf16 %v29_v1, %v28_v0  ;;  %v31_v5 = vld [vmem:[%s728_s1 + $0x18] sm:$0xff]  ;;  %v114_v7 = vld [vmem:[%s730_s3] sm:$0xff]  ;;  %448 = vmatprep.subr.bf16.mxu1 %v530_v3  ;;  %v115_v8 = vld [vmem:[%s730_s3 + $0x8] sm:$0xff]  ;;  %404 = vmatprep.mubr.msk.f32.mxu1 %vm531_vm0, %v532_v6 }
   0x3   :  { %v116_v9 = vld [vmem:[%s730_s3 + $0x10] sm:$0xff]  ;;  %v117_v10 = vld [vmem:[%s730_s3 + $0x18] sm:$0xff]  ;;  %v446_v11 = vpack.c.bf16 %v31_v5, %v30_v2  ;;  %v449_v12 = vpack.c.bf16 %v115_v8, %v114_v7 }
   0x4   :  { %444 = vmatpush3.bf16.msra.mxu0 %v443_v4  ;;  %v452_v13 = vpack.c.bf16 %v117_v10, %v116_v9 }
   0x5   :  { %445 = vmatprep.subr.bf16.mxu0 %v530_v3  ;;  %450 = vmatpush3.bf16.msra.mxu1 %v449_v12 }
   0x6   :  { %12 = vsyncpa [#allocation3], 0  ;;  %451 = vmatprep.subr.bf16.mxu1 %v530_v3  ;;  %v118_v14 = vld [vmem:[%s730_s3 + $0x20] sm:$0xff]  ;;  %v119_v15 = vld [vmem:[%s730_s3 + $0x28] sm:$0xff]  ;;  %vm39_vm1 = vcmask 261120   ;;  %vm302_vm2 = vcmask 64512  }
   0x7   :  { %v27_v16 = vld [vmem:[%s727_s0] sm:$0xff]  ;;  %v455_v17 = vpack.c.bf16 %v119_v15, %v118_v14  ;;  %v120_v18 = vld [vmem:[%s730_s3 + $0x30] sm:$0xff]  ;;  %v121_v19 = vld [vmem:[%s730_s3 + $0x38] sm:$0xff] }
   0x8   :  { %447 = vmatpush3.bf16.msra.mxu0 %v446_v11  ;;  %v458_v20 = vpack.c.bf16 %v121_v19, %v120_v18  ;;  %v122_v21 = vld [vmem:[%s730_s3 + $0x40] sm:$0xff]  ;;  %v123_v22 = vld [vmem:[%s730_s3 + $0x48] sm:$0xff]  ;;  %v124_v24 = vld [vmem:[%s730_s3 + $0x50] sm:$0xff] }
   0x9   :  { %472 = vmatprep.subr.bf16.mxu0 %v530_v3  ;;  %453 = vmatpush3.bf16.msra.mxu1 %v452_v13  ;;  %v461_v23 = vpack.c.bf16 %v123_v22, %v122_v21  ;;  %v125_v25 = vld [vmem:[%s730_s3 + $0x58] sm:$0xff]  ;;  %v126_v27 = vld [vmem:[%s730_s3 + $0x60] sm:$0xff]  ;;  %v127_v28 = vld [vmem:[%s730_s3 + $0x68] sm:$0xff] }
   0xa   :  { %454 = vmatprep.subr.bf16.mxu1 %v530_v3  ;;  %v464_v26 = vpack.c.bf16 %v125_v25, %v124_v24  ;;  %v467_v29 = vpack.c.bf16 %v127_v28, %v126_v27  ;;  %v128_v30 = vld [vmem:[%s730_s3 + $0x70] sm:$0xff]  ;;  %v129_v31 = vld [vmem:[%s730_s3 + $0x78] sm:$0xff]  ;;  %v208_v33 = vld [vmem:[%s732_s5] sm:$0xff] }
   0xb   :  { %370 = vmatmul.mubr.msk.f32.vlgmr.msra.gmra.mrb[0].mxu0 %vm39_vm1, %v27_v16  ;;  %v470_v32 = vpack.c.bf16 %v129_v31, %v128_v30  ;;  %v209_v34 = vld [vmem:[%s732_s5 + $0x8] sm:$0xff]  ;;  %v210_v35 = vld [vmem:[%s732_s5 + $0x10] sm:$0xff]  ;;  %v211_v37 = vld [vmem:[%s732_s5 + $0x18] sm:$0xff] }
   0xc   :  { %439 = vmatprep.mubr.msk.f32.mxu0 %vm531_vm0, %v532_v6  ;;  %v473_v36 = vpack.c.bf16 %v209_v34, %v208_v33  ;;  %v476_v38 = vpack.c.bf16 %v211_v37, %v210_v35  ;;  %v212_v39 = vld [vmem:[%s732_s5 + $0x20] sm:$0xff]  ;;  %v213_v40 = vld [vmem:[%s732_s5 + $0x28] sm:$0xff]  ;;  %v214_v42 = vld [vmem:[%s732_s5 + $0x30] sm:$0xff] }
   0xd   :  { %456 = vmatpush3.bf16.msra.mxu1 %v455_v17  ;;  %v479_v41 = vpack.c.bf16 %v213_v40, %v212_v39  ;;  %v215_v43 = vld [vmem:[%s732_s5 + $0x38] sm:$0xff]  ;;  %v216_v45 = vld [vmem:[%s732_s5 + $0x40] sm:$0xff]  ;;  %v217_v46 = vld [vmem:[%s732_s5 + $0x48] sm:$0xff] }
   0xe   :  { %457 = vmatprep.subr.bf16.mxu1 %v530_v3  ;;  %474 = vmatpush3.bf16.msra.mxu0 %v473_v36  ;;  %v482_v44 = vpack.c.bf16 %v215_v43, %v214_v42  ;;  %v485_v47 = vpack.c.bf16 %v217_v46, %v216_v45  ;;  %v318_v48 = vld [vmem:[%s729_s2] ss:$0 sm:$0xff]  ;;  %v218_v53 = vld [vmem:[%s732_s5 + $0x50] sm:$0xff]  ;;  %v219_v54 = vld [vmem:[%s732_s5 + $0x58] sm:$0xff] }
   0xf   :  { %475 = vmatprep.subr.bf16.mxu0 %v530_v3  ;;  %v488_v55 = vpack.c.bf16 %v219_v54, %v218_v53  ;;  %v220_v56 = vld [vmem:[%s732_s5 + $0x60] sm:$0xff]  ;;  %v221_v57 = vld [vmem:[%s732_s5 + $0x68] sm:$0xff]  ;;  %v222_v59 = vld [vmem:[%s732_s5 + $0x70] sm:$0xff] }
  0x10   :  { %v491_v58 = vpack.c.bf16 %v221_v57, %v220_v56  ;;  %v223_v60 = vld [vmem:[%s732_s5 + $0x78] sm:$0xff]  ;;  %v320_v62 = vld [vmem:[%s731_s4] ss:$0 sm:$0xff]  ;;  %s533_s5 = smov [#allocation2]  }
  0x11   :  { %459 = vmatpush3.bf16.msra.mxu1 %v458_v20  ;;  %v494_v61 = vpack.c.bf16 %v223_v60, %v222_v59  ;;  %v321_v4 = vld [vmem:[%s733_s6] ss:$0 sm:$0xff]  ;;  %s310_s26 = sshll.u32 %s533_s5, 4  ;;  %s311_s26 = int_to_ptr.vmem [resolvable:$true] %s310_s26 }
  0x12   :  { %460 = vmatprep.subr.bf16.mxu1 %v530_v3  ;;  %477 = vmatpush3.bf16.msra.mxu0 %v476_v38  ;;  %s506_s4 = scalar_lea.vmem %s311_s26, 128  ;;  %p511_p1 = scmp.lt.s32.totalorder %s311_s26, %s311_s26 }
  0x13   :  { %478 = vmatprep.subr.bf16.mxu0 %v530_v3  ;;  %p507_p0 = scmp.ne.s32.totalorder %s311_s26, %s506_s4  ;;  %p512_p2 = scmp.lt.s32.totalorder %s506_s4, %s506_s4 }
  0x15   :  { %462 = vmatpush3.bf16.msra.mxu1 %v461_v23  ;;  %p513_p3 = por %p512_p2, %p511_p1 }
  0x16   :  { %463 = vmatprep.subr.bf16.mxu1 %v530_v3  ;;  %480 = vmatpush3.bf16.msra.mxu0 %v479_v41 }
  0x17   :  { %481 = vmatprep.subr.bf16.mxu0 %v530_v3  ;;  %p514_p4 = pnand %p513_p3, %p507_p0 }
  0x19   :  { %465 = vmatpush3.bf16.msra.mxu1 %v464_v26 }
  0x1a   :  { %466 = vmatprep.subr.bf16.mxu1 %v530_v3  ;;  %483 = vmatpush3.bf16.msra.mxu0 %v482_v44 }
  0x1b   :  { %484 = vmatprep.subr.bf16.mxu0 %v530_v3 }
  0x1d   :  { %468 = vmatpush3.bf16.msra.mxu1 %v467_v29 }
  0x1e   :  { %469 = vmatprep.subr.bf16.mxu1 %v530_v3  ;;  %486 = vmatpush3.bf16.msra.mxu0 %v485_v47 }
  0x1f   :  { %487 = vmatprep.subr.bf16.mxu0 %v530_v3 }
  0x21   :  { %471 = vmatpush3.bf16.msra.mxu1 %v470_v32 }
  0x22   :  { %489 = vmatpush3.bf16.msra.mxu0 %v488_v55 }
  0x23   :  { %490 = vmatprep.subr.bf16.mxu0 %v530_v3 }
  0x26   :  { %492 = vmatpush3.bf16.msra.mxu0 %v491_v58 }
  0x27   :  { %493 = vmatprep.subr.bf16.mxu0 %v530_v3 }
  0x2a   :  { %495 = vmatpush3.bf16.msra.mxu0 %v494_v61 }
  0xde   :  { %v109_v49 = vpop.f32.mrb[0].mxu0 }
  0xdf   :  { %v110_v50 = vadd.f32 %v318_v48, %v109_v49  ;;  %v371_v51 = vpop.f32.mrb[1].mxu0 }
  0xe1   :  { %500 = vtanh.f32 %v110_v50 }
  0xeb   :  { %v501_v52 = vpop.eup %500 }
  0xec   :  { %405 = vmatmul.mubr.f32.vlgmr.msra.gmra.mrb[0].mxu1 %v501_v52 }
 0x1bf   :  { %v203_v63 = vpop.f32.mrb[0].mxu1 }
 0x1c0   :  { %v204_v0 = vadd.f32 %v320_v62, %v203_v63  ;;  %v406_v1 = vpop.f32.mrb[1].mxu1 }
 0x1c2   :  { %502 = vtanh.f32 %v204_v0 }
 0x1cc   :  { %v503_v2 = vpop.eup %502 }
 0x1cd   :  { %440 = vmatmul.mubr.f32.vlgmr.msra.gmra.mrb[2].mxu0 %v503_v2 }
 0x2a0   :  { %v297_v5 = vpop.f32.mrb[2].mxu0 }
 0x2a1   :  { %v298_v6 = vadd.f32 %v321_v4, %v297_v5  ;;  %v441_v7 = vpop.f32.mrb[3].mxu0 }
 0x2a3   :  { %504 = vtanh.f32 %v298_v6 }
 0x2ad   :  { %v505_v3 = vpop.eup %504 }
 0x2ae   :  { %303 = vst.msk [vmem:[#allocation2] sm:$0xff] %vm302_vm2, %v505_v3 }
 0x2af   :  { %517 = shalt.err (!%p514_p4)
}
 0x2b0   :  { %s518_s6 = scalar_lea.hbm %s734_s7, 128 }
 0x2b1   :  { %p519_p5 = scmp.ne.s32.totalorder %s734_s7, %s518_s6  ;;  %p522_p6 = scmp.lt.u32.totalorder %s518_s6, %s734_s7 }
 0x2b3   :  { %p524_p7 = pnand %p522_p6, %p519_p5 }
 0x2b5   :  { %527 = shalt.err (!%p524_p7)
}
 0x2b6   :  { %313 = dma.vmem_to_hbm [thread:$0]  %s311_s26, 128, %s734_s7, [#allocation3]  }
 0x2b7   :  { %528 = dma.done.wait [#allocation3], 128  }
 0x2b8   :  { %529 = vsyncadd [#allocation3], 4294967168 }
 0x2b9   :  { %317 = vsyncpa [#allocation3], 1 }

</bundles_post_ra>
